<compile_context>
chip_gen: v7x
topology: tpu7x:2x2x1
jax: 0.10.0
libtpu: 0.0.40
codegen_flags: <defaults>
</compile_context>

<pallas_src>
import functools

import jax
import jax.numpy as jnp
from jax.experimental import pallas as pl
from jax.experimental.pallas import tpu as pltpu

_LANES = 128
_SUBLANES = 8
_ALIGN = _SUBLANES * _LANES                  # 1024-element kernel granularity
_BLOCK_ROWS_CAP = 8192                       # hard cap on rows per block
_VMEM_INPUT_BUDGET = 12 * 1024 * 1024        # target for double-buffered inputs
_VMEM_LIMIT = 32 * 1024 * 1024


def _weight(err, inbalance):
    if inbalance == 1.0:
        return jnp.abs(err)
    # inbalance * relu(err) + relu(-err)
    return inbalance * jnp.maximum(err, 0.0) + jnp.maximum(-err, 0.0)


def _depth_l1_kernel(est_ref, gt_ref, mask_ref, sum_ref, cnt_ref, *,
                     inbalance, rows_total, block_rows, ragged):
    i = pl.program_id(0)

    @pl.when(i == 0)
    def _():
        sum_ref[...] = jnp.zeros_like(sum_ref)
        cnt_ref[...] = jnp.zeros_like(cnt_ref)

    mraw = mask_ref[...]
    m_in = mraw if mraw.dtype == jnp.bool_ else (mraw != 0)
    err = est_ref[...].astype(jnp.float32) - gt_ref[...].astype(jnp.float32)
    w = _weight(err, inbalance)

    def accumulate(m):
        # jnp.where (select) also kills NaN/Inf garbage in out-of-bounds rows
        # of the ragged last block; do NOT replace with `w * mask`.
        ws = jnp.where(m, w, 0.0)
        cs = m.astype(jnp.float32)
        # (block_rows,128) -> (block_rows//8, 8, 128) is a no-op vreg
        # relabeling; sum(axis=0) is a chain of pure-VPU vreg adds into the
        # (8,128) resident output accumulators.
        sum_ref[...] += ws.reshape(-1, _SUBLANES, _LANES).sum(axis=0)
        cnt_ref[...] += cs.reshape(-1, _SUBLANES, _LANES).sum(axis=0)

    if ragged:
        last = pl.num_programs(0) - 1

        @pl.when(i < last)
        def _():                     # interior blocks: no validity math at all
            accumulate(m_in)

        @pl.when(i == last)
        def _():                     # ragged last block: mask invalid rows
            rows_left = rows_total - i * block_rows
            sub = jax.lax.broadcasted_iota(jnp.int32, (block_rows, _LANES), 0)
            accumulate(jnp.logical_and(m_in, sub < rows_left))
    else:
        accumulate(m_in)


def _jax_masked_sums(est, gt, msk, inbalance):
    """Plain-JAX masked weighted-sum + count (tiny inputs / <1024-elem tails)."""
    m = msk if msk.dtype == jnp.bool_ else (msk != 0)
    err = est.astype(jnp.float32) - gt.astype(jnp.float32)
    w = _weight(err, inbalance)
    return jnp.sum(jnp.where(m, w, 0.0)), jnp.sum(m.astype(jnp.float32))


def _masked_sums(depth_est, depth_gt, mask, inbalance):
    """Returns (weighted_sum, masked_count) scalars via a Pallas reduction."""
    est = depth_est.reshape(-1)
    gt = depth_gt.reshape(-1)
    msk = mask.reshape(-1)
    n = est.shape[0]

    n_kernel = (n // _ALIGN) * _ALIGN        # 1024-aligned prefix -> kernel
    s_tail = jnp.float32(0.0)
    c_tail = jnp.float32(0.0)
    if n_kernel < n:
        # <1024-element tail reduced in plain JAX (no full-array pad anymore).
        s_tail, c_tail = _jax_masked_sums(
            est[n_kernel:], gt[n_kernel:], msk[n_kernel:], inbalance)
    if n_kernel == 0:
        return s_tail, c_tail                # whole input smaller than one vreg

    if n_kernel < n:
        # NOTE: contiguous-prefix slice; XLA may still copy it, but this only
        # triggers for non-1024-aligned totals (rare for real depth maps).
        est, gt, msk = est[:n_kernel], gt[:n_kernel], msk[:n_kernel]

    rows = n_kernel // _LANES                # multiple of 8 by construction
    est2 = est.reshape(rows, _LANES)         # free bitcast reshapes
    gt2 = gt.reshape(rows, _LANES)
    msk2 = msk.reshape(rows, _LANES)

    # Block sizing: keep double-buffered inputs within ~12 MiB whatever the
    # dtype mix (f32 data + bool mask -> 5456 rows, f32 mask -> 4096,
    # bf16 data -> 8192 cap).  Rows per block stay a multiple of 8.
    bytes_per_row = _LANES * (est2.dtype.itemsize + gt2.dtype.itemsize
                              + msk2.dtype.itemsize)
    cap = (_VMEM_INPUT_BUDGET // (2 * bytes_per_row)) // _SUBLANES * _SUBLANES
    cap = max(_SUBLANES, min(cap, _BLOCK_ROWS_CAP))
    block_rows = min(cap, rows)
    num_blocks = pl.cdiv(rows, block_rows)
    ragged = (rows % block_rows) != 0

    data_spec = pl.BlockSpec((block_rows, _LANES), lambda i: (i, 0))
    out_spec = pl.BlockSpec((_SUBLANES, _LANES), lambda i: (0, 0))

    kernel = functools.partial(
        _depth_l1_kernel, inbalance=float(inbalance), rows_total=rows,
        block_rows=block_rows, ragged=ragged)

    bytes_accessed = (n_kernel * (est2.dtype.itemsize + gt2.dtype.itemsize
                                  + msk2.dtype.itemsize)
                      + 2 * _SUBLANES * _LANES * 4)

    s_part, c_part = pl.pallas_call(
        kernel,
        out_shape=(jax.ShapeDtypeStruct((_SUBLANES, _LANES), jnp.float32),
                   jax.ShapeDtypeStruct((_SUBLANES, _LANES), jnp.float32)),
        grid_spec=pltpu.PrefetchScalarGridSpec(
            num_scalar_prefetch=0,
            grid=(num_blocks,),
            in_specs=[data_spec, data_spec, data_spec],
            out_specs=[out_spec, out_spec],
        ),
        compiler_params=pltpu.CompilerParams(
            dimension_semantics=("arbitrary",),
            vmem_limit_bytes=_VMEM_LIMIT),
        cost_estimate=pl.CostEstimate(
            flops=8 * n_kernel, transcendentals=0,
            bytes_accessed=bytes_accessed),
    )(est2, gt2, msk2)

    # Tiny final reduce of 2 x 1024 elements in plain JAX.
    return jnp.sum(s_part) + s_tail, jnp.sum(c_part) + c_tail


def depth_l1_loss(depth_est, depth_gt, mask, inbalance_to_closer):
    """Pallas implementation of DepthL1Loss.forward.

    `inbalance_to_closer` must be a static Python number (hyperparameter), just
    like in the PyTorch module.  For inbalance==1 an empty mask yields NaN
    (torch mean of an empty tensor); otherwise it yields 0 (torch else-branch).
    """
    if depth_est.size == 0:
        s = jnp.float32(0.0)
        c = jnp.float32(0.0)
    else:
        s, c = _masked_sums(depth_est, depth_gt, mask, inbalance_to_closer)
    if inbalance_to_closer == 1:
        return s / c
    return jnp.where(c > 0, s / c, jnp.float32(0.0))


if __name__ == "__main__":
    key = jax.random.PRNGKey(0)

    def ref_loss(est, gt, msk, inbalance):
        mb = msk if msk.dtype == jnp.bool_ else (msk != 0)
        mf = mb.astype(jnp.float32)
        err = est.astype(jnp.float32) - gt.astype(jnp.float32)
        cnt = jnp.sum(mf)
        if inbalance == 1:
            return jnp.sum(jnp.abs(err) * mf) / cnt
        s = (inbalance * jnp.sum(jnp.maximum(err, 0.0) * mf)
             + jnp.sum(jnp.maximum(-err, 0.0) * mf))
        return jnp.where(cnt > 0, s / cnt, jnp.float32(0.0))

    def make_inputs(k, shape, dtype=jnp.float32, p=0.7):
        k1, k2, k3 = jax.random.split(k, 3)
        est = jax.random.uniform(k1, shape, jnp.float32, 0.1, 10.0).astype(dtype)
        gt = jax.random.uniform(k2, shape, jnp.float32, 0.1, 10.0).astype(dtype)
        msk = jax.random.bernoulli(k3, p, shape)
        return est, gt, msk

    keys = jax.random.split(key, 6)

    # 1) small aligned depth map (n = 1024), both branches, bool mask.
    est, gt, msk = make_inputs(keys[0], (2, 1, 16, 32))
    for inb in (1.0, 2.0):
        out = jax.block_until_ready(depth_l1_loss(est, gt, msk, inb))
        ref = ref_loss(est, gt, msk, inb)
        assert jnp.allclose(out, ref, rtol=1e-5, atol=1e-5), (inb, out, ref)

    # 2) non-aligned total (n = 1261): kernel prefix + plain-JAX tail.
    est, gt, msk = make_inputs(keys[1], (1, 1, 13, 97))
    out = jax.block_until_ready(depth_l1_loss(est, gt, msk, 2.0))
    ref = ref_loss(est, gt, msk, 2.0)
    assert jnp.allclose(out, ref, rtol=1e-5, atol=1e-5), (out, ref)

    # 3) multi-block grid with a ragged last block (rows=6000 > block cap).
    est, gt, msk = make_inputs(keys[2], (1, 1, 750, 1024))
    out = jax.block_until_ready(depth_l1_loss(est, gt, msk, 1.0))
    ref = ref_loss(est, gt, msk, 1.0)
    assert jnp.allclose(out, ref, rtol=1e-5, atol=1e-4), (out, ref)

    # 4) bf16 inputs travel in native dtype, upcast in-kernel.
    est, gt, msk = make_inputs(keys[3], (2, 1, 16, 64), dtype=jnp.bfloat16)
    out = jax.block_until_ready(depth_l1_loss(est, gt, msk, 2.0))
    ref = ref_loss(est, gt, msk, 2.0)
    assert jnp.allclose(out, ref, rtol=1e-5, atol=1e-5), (out, ref)

    # 5) float (0/1) mask passes natively, compared `!= 0` in-kernel.
    est, gt, msk = make_inputs(keys[4], (2, 1, 16, 32))
    mskf = msk.astype(jnp.float32)
    out = jax.block_until_ready(depth_l1_loss(est, gt, mskf, 2.0))
    ref = ref_loss(est, gt, mskf, 2.0)
    assert jnp.allclose(out, ref, rtol=1e-5, atol=1e-5), (out, ref)

    # 6) empty mask, inbalance != 1 -> 0 (torch else-branch).
    est, gt, msk = make_inputs(keys[5], (2, 1, 16, 32))
    out = jax.block_until_ready(
        depth_l1_loss(est, gt, jnp.zeros_like(msk), 2.0))
    assert out == 0.0, out

    print("KERNEL_OK")
</pallas_src>

<mosaic_0001>
module attributes {stable_mosaic.version = 11 : i64} {
  func.func @_depth_l1_kernel(%arg0: i32, %arg1: memref<8x128xf32, #tpu.memory_space<vmem>>, %arg2: memref<8x128xf32, #tpu.memory_space<vmem>>, %arg3: memref<8x128xi32, #tpu.memory_space<vmem>>, %arg4: memref<8x128xf32, #tpu.memory_space<vmem>>, %arg5: memref<8x128xf32, #tpu.memory_space<vmem>>) attributes {dimension_semantics = [#tpu.dimension_semantics<arbitrary>], iteration_bounds = array<i64: 1>, scalar_prefetch = 0 : i64, scratch_operands = 0 : i64, tpu.core_type = #tpu.core_type<tc>, window_params = [{transform_indices = @transform_0, window_bounds = array<i64: 8, 128>}, {transform_indices = @transform_1, window_bounds = array<i64: 8, 128>}, {transform_indices = @transform_2, window_bounds = array<i64: 8, 128>}, {pipeline_mode = #tpu.pipeline_mode<synchronous>, transform_indices = @transform_3, window_bounds = array<i64: 8, 128>}, {pipeline_mode = #tpu.pipeline_mode<synchronous>, transform_indices = @transform_4, window_bounds = array<i64: 8, 128>}]} {
    %c0_i32 = arith.constant 0 : i32
    %0 = arith.cmpi eq, %arg0, %c0_i32 : i32
    %1 = arith.extui %0 : i1 to i32
    %c0_i32_0 = arith.constant 0 : i32
    %2 = arith.cmpi ne, %1, %c0_i32_0 : i32
    scf.if %2 {
      %cst_17 = arith.constant 0.000000e+00 : f32
      %23 = vector.broadcast %cst_17 : f32 to vector<8x128xf32>
      %c0_18 = arith.constant 0 : index
      %c0_19 = arith.constant 0 : index
      %24 = vector.load %arg4[%c0_18, %c0_19] : memref<8x128xf32, #tpu.memory_space<vmem>>, vector<8x128xf32>
      tpu.vector_store %arg4[%c0_18, %c0_19], %23 {strides = array<i32>} : memref<8x128xf32, #tpu.memory_space<vmem>>, vector<8x128xf32>,
      %cst_20 = arith.constant 0.000000e+00 : f32
      %25 = vector.broadcast %cst_20 : f32 to vector<8x128xf32>
      %c0_21 = arith.constant 0 : index
      %c0_22 = arith.constant 0 : index
      %26 = vector.load %arg5[%c0_21, %c0_22] : memref<8x128xf32, #tpu.memory_space<vmem>>, vector<8x128xf32>
      tpu.vector_store %arg5[%c0_21, %c0_22], %25 {strides = array<i32>} : memref<8x128xf32, #tpu.memory_space<vmem>>, vector<8x128xf32>,
    } else {
    }
    %c0 = arith.constant 0 : index
    %c0_1 = arith.constant 0 : index
    %3 = vector.load %arg3[%c0, %c0_1] : memref<8x128xi32, #tpu.memory_space<vmem>>, vector<8x128xi32>
    %cst = arith.constant dense<0> : vector<8x128xi32>
    %4 = arith.cmpi ne, %3, %cst : vector<8x128xi32>
    %c0_2 = arith.constant 0 : index
    %c0_3 = arith.constant 0 : index
    %5 = vector.load %arg1[%c0_2, %c0_3] : memref<8x128xf32, #tpu.memory_space<vmem>>, vector<8x128xf32>
    %c0_4 = arith.constant 0 : index
    %c0_5 = arith.constant 0 : index
    %6 = vector.load %arg2[%c0_4, %c0_5] : memref<8x128xf32, #tpu.memory_space<vmem>>, vector<8x128xf32>
    %7 = arith.subf %5, %6 : vector<8x128xf32>
    %8 = math.absf %7 : vector<8x128xf32>
    %cst_6 = arith.constant 0.000000e+00 : f32
    %9 = vector.broadcast %cst_6 : f32 to vector<8x128xf32>
    %10 = arith.select %4, %8, %9 : vector<8x128xi1>, vector<8x128xf32>
    %11 = arith.extui %4 : vector<8x128xi1> to vector<8x128xi32>
    %12 = arith.sitofp %11 : vector<8x128xi32> to vector<8x128xf32>
    %c0_7 = arith.constant 0 : index
    %c0_8 = arith.constant 0 : index
    %13 = vector.load %arg4[%c0_7, %c0_8] : memref<8x128xf32, #tpu.memory_space<vmem>>, vector<8x128xf32>
    %14 = vector.shape_cast %10 : vector<8x128xf32> to vector<1x8x128xf32>
    %cst_9 = arith.constant dense<0.000000e+00> : vector<8x128xf32>
    %15 = vector.multi_reduction <add>, %14, %cst_9 [0] : vector<1x8x128xf32> to vector<8x128xf32>
    %16 = arith.addf %13, %15 : vector<8x128xf32>
    %c0_10 = arith.constant 0 : index
    %c0_11 = arith.constant 0 : index
    %17 = vector.load %arg4[%c0_10, %c0_11] : memref<8x128xf32, #tpu.memory_space<vmem>>, vector<8x128xf32>
    tpu.vector_store %arg4[%c0_10, %c0_11], %16 {strides = array<i32>} : memref<8x128xf32, #tpu.memory_space<vmem>>, vector<8x128xf32>,
    %c0_12 = arith.constant 0 : index
    %c0_13 = arith.constant 0 : index
    %18 = vector.load %arg5[%c0_12, %c0_13] : memref<8x128xf32, #tpu.memory_space<vmem>>, vector<8x128xf32>
    %19 = vector.shape_cast %12 : vector<8x128xf32> to vector<1x8x128xf32>
    %cst_14 = arith.constant dense<0.000000e+00> : vector<8x128xf32>
    %20 = vector.multi_reduction <add>, %19, %cst_14 [0] : vector<1x8x128xf32> to vector<8x128xf32>
    %21 = arith.addf %18, %20 : vector<8x128xf32>
    %c0_15 = arith.constant 0 : index
    %c0_16 = arith.constant 0 : index
    %22 = vector.load %arg5[%c0_15, %c0_16] : memref<8x128xf32, #tpu.memory_space<vmem>>, vector<8x128xf32>
    tpu.vector_store %arg5[%c0_15, %c0_16], %21 {strides = array<i32>} : memref<8x128xf32, #tpu.memory_space<vmem>>, vector<8x128xf32>,
    return
  }
  func.func @transform_0(%arg0: i32) -> (i32, i32) {
    %c0_i32 = arith.constant 0 : i32
    %c0_i32_0 = arith.constant 0 : i32
    return %arg0, %c0_i32 : i32, i32
  }
  func.func @transform_1(%arg0: i32) -> (i32, i32) {
    %c0_i32 = arith.constant 0 : i32
    %c0_i32_0 = arith.constant 0 : i32
    return %arg0, %c0_i32 : i32, i32
  }
  func.func @transform_2(%arg0: i32) -> (i32, i32) {
    %c0_i32 = arith.constant 0 : i32
    %c0_i32_0 = arith.constant 0 : i32
    return %arg0, %c0_i32 : i32, i32
  }
  func.func @transform_3(%arg0: i32) -> (i32, i32) {
    %c0_i32 = arith.constant 0 : i32
    %c0_i32_0 = arith.constant 0 : i32
    %c0_i32_1 = arith.constant 0 : i32
    return %c0_i32, %c0_i32_0 : i32, i32
  }
  func.func @transform_4(%arg0: i32) -> (i32, i32) {
    %c0_i32 = arith.constant 0 : i32
    %c0_i32_0 = arith.constant 0 : i32
    %c0_i32_1 = arith.constant 0 : i32
    return %c0_i32, %c0_i32_0 : i32, i32
  }
}

</mosaic_0001>

<bundles_post_ra>
// kernel: tpu_custom_call.1
= control target key start
LH: loop header
LB: loop body
LE: loop exit
PB: predicated region body
PF: predicated region fallthrough
CT: control target
= control target key end

     0   :  { %10 = vsyncpa [#allocation3], 0  ;;  %s230_s0 = inlined_call_operand.vmem [shape: f32[8,128], index: 0, kind: input, shape index: {}]   ;;  %s231_s1 = inlined_call_operand.hbm [shape: f32[8,128], index: 1, kind: input, shape index: {}]   ;;  %s232_s2 = inlined_call_operand.vmem [shape: s32[8,128], index: 2, kind: input, shape index: {}]   ;;  %s233_s3 = inlined_call_operand.hbm [shape: f32[8,128], index: 3, kind: output, shape index: {0}]   ;;  %s234_s4 = inlined_call_operand.hbm [shape: f32[8,128], index: 4, kind: output, shape index: {1}]  }
   0x1   :  { %11 = vsyncpa [#allocation4], 0 }
   0x2   :  { %12 = vsyncpa [#allocation7], 0  ;;  %s159_s15 = smov [#allocation2]   ;;  %s87_s19 = scalar_lea.hbm %s231_s1, 128 }
   0x3   :  { %s21_s16 = sshll.u32 %s159_s15, 4  ;;  %p88_p0 = scmp.ne.s32.totalorder %s231_s1, %s87_s19  ;;  %s22_s16 = int_to_ptr.vmem [resolvable:$true] %s21_s16 }
   0x4   :  { %p91_p1 = scmp.lt.u32.totalorder %s87_s19, %s231_s1 }
   0x6   :  { %p93_p2 = pnand %p91_p1, %p88_p0 }
   0x8   :  { %96 = shalt.err (!%p93_p2)
}
   0x9   :  { %s97_s24 = scalar_lea.vmem %s22_s16, 128  ;;  %p102_p4 = scmp.lt.s32.totalorder %s22_s16, %s22_s16 }
   0xa   :  { %p98_p3 = scmp.ne.s32.totalorder %s22_s16, %s97_s24  ;;  %p103_p5 = scmp.lt.s32.totalorder %s97_s24, %s97_s24 }
   0xc   :  { %p104_p6 = por %p103_p5, %p102_p4 }
   0xe   :  { %p105_p7 = pnand %p104_p6, %p98_p3 }
  0x10   :  { %108 = shalt.err (!%p105_p7)
}
  0x11   :  { %24 = dma.hbm_to_vmem [thread:$0]  %s231_s1, 128, %s22_s16, [#allocation3]  }
  0x12   :  { %153 = dma.done.wait [#allocation3], 128  }
  0x13   :  { %154 = vsyncadd [#allocation3], 4294967168  ;;  %v36_v0 = vld [vmem:[%s232_s2] sm:$0xff]  ;;  %s160_s5 = smov [#allocation6]   ;;  %v161_v4 = vmov 0.0   ;;  %s162_s7 = smov [#allocation5]  }
  0x14   :  { %v38_v1 = vld [vmem:[%s230_s0] sm:$0xff]  ;;  %s69_s6 = sshll.u32 %s160_s5, 4  ;;  %vm37_vm0 = vcmp.ne.s32.totalorder %v36_v0, 0  ;;  %s59_s8 = sshll.u32 %s162_s7, 4  ;;  %s70_s6 = int_to_ptr.vmem [resolvable:$true] %s69_s6  ;;  %s60_s8 = int_to_ptr.vmem [resolvable:$true] %s59_s8 }
  0x15   :  { %v39_v2 = vld [vmem:[#allocation2] sm:$0xff]  ;;  %v82_v5 = vsel %vm37_vm0, 1.0, %v161_v4  ;;  %s109_s1 = scalar_lea.vmem %s70_s6, 128  ;;  %p114_p9 = scmp.lt.s32.totalorder %s70_s6, %s70_s6 }
  0x16   :  { %v40_v3 = vsub.f32 %v38_v1, %v39_v2  ;;  %52 = vst [vmem:[#allocation6] sm:$0xff] %v82_v5  ;;  %p110_p8 = scmp.ne.s32.totalorder %s70_s6, %s109_s1  ;;  %p115_p10 = scmp.lt.s32.totalorder %s109_s1, %s109_s1 }
  0x18   :  { %v41_v6 = vand.u32 2147483647, %v40_v3  ;;  %p116_p11 = por %p115_p10, %p114_p9 }
  0x1a   :  { %v42_v7 = vsel %vm37_vm0, %v41_v6, 0.0  ;;  %p117_p12 = pnand %p116_p11, %p110_p8 }
  0x1c   :  { %120 = shalt.err (!%p117_p12)
}
  0x1d   :  { %s121_s9 = scalar_lea.hbm %s234_s4, 128 }
  0x1e   :  { %p122_p13 = scmp.ne.s32.totalorder %s234_s4, %s121_s9  ;;  %p125_p0 = scmp.lt.u32.totalorder %s121_s9, %s234_s4 }
  0x20   :  { %p127_p1 = pnand %p125_p0, %p122_p13 }
  0x22   :  { %130 = shalt.err (!%p127_p1)
}
  0x23   :  { %72 = dma.vmem_to_hbm [thread:$0]  %s70_s6, 128, %s234_s4, [#allocation7]   ;;  %48 = vst [vmem:[#allocation5] sm:$0xff] %v42_v7 }
  0x24   :  { %s131_s16 = scalar_lea.vmem %s60_s8, 128  ;;  %p136_p3 = scmp.lt.s32.totalorder %s60_s8, %s60_s8 }
  0x25   :  { %p132_p2 = scmp.ne.s32.totalorder %s60_s8, %s131_s16  ;;  %p137_p4 = scmp.lt.s32.totalorder %s131_s16, %s131_s16 }
  0x27   :  { %p138_p5 = por %p137_p4, %p136_p3 }
  0x29   :  { %p139_p6 = pnand %p138_p5, %p132_p2 }
  0x2b   :  { %142 = shalt.err (!%p139_p6)
}
  0x2c   :  { %s143_s19 = scalar_lea.hbm %s233_s3, 128 }
  0x2d   :  { %p144_p7 = scmp.ne.s32.totalorder %s233_s3, %s143_s19  ;;  %p147_p8 = scmp.lt.u32.totalorder %s143_s19, %s233_s3 }
  0x2f   :  { %p149_p9 = pnand %p147_p8, %p144_p7 }
  0x31   :  { %152 = shalt.err (!%p149_p9)
}
  0x32   :  { %62 = dma.vmem_to_hbm [thread:$0]  %s60_s8, 128, %s233_s3, [#allocation4]  }
  0x33   :  { %155 = dma.done.wait [#allocation4], 128  }
  0x34   :  { %156 = vsyncadd [#allocation4], 4294967168 }
  0x35   :  { %157 = dma.done.wait [#allocation7], 128  }
  0x36   :  { %158 = vsyncadd [#allocation7], 4294967168 }
  0x37   :  { %79 = vsyncpa [#allocation3], 1 }
  0x38   :  { %80 = vsyncpa [#allocation4], 1 }
  0x39   :  { %81 = vsyncpa [#allocation7], 1 }

</bundles_post_ra>
